<compile_context>
chip_gen: v7x
topology: tpu7x:2x2x1
jax: 0.10.0
libtpu: 0.0.40
codegen_flags: <defaults>
</compile_context>

<pallas_src>
import functools

import jax
import jax.numpy as jnp
from jax.experimental import pallas as pl
from jax.experimental.pallas import tpu as pltpu


def _residual_block_kernel(has_proj, x_ref, w1_ref, b1_ref, w2_ref, b2_ref, out_ref):
    # x_ref : (TB, in_d)            bf16 (compute dtype)
    # w1_ref: (in_d, out_d)         bf16   -- or (in_d, 2*out_d) fused [W1|Wp]
    # b1_ref: (1, out_d) / (1,2*out_d)  f32
    # w2_ref: (out_d, out_d)        bf16
    # b2_ref: (1, out_d)            f32
    # out_ref:(TB, out_d)           out_dtype (bf16 by default)
    out_d = out_ref.shape[-1]

    x = x_ref[...]                                   # bf16 MXU operand

    # Fused first matmul: x @ [W1 | Wp]  (proj path) or x @ W1 (identity path).
    t = jnp.dot(x, w1_ref[...], preferred_element_type=jnp.float32) + b1_ref[...]

    if has_proj:
        z = jnp.maximum(t[:, :out_d], 0.0)           # relu(x @ W1 + b1)
        u = t[:, out_d:]                             # x @ Wp + bp   (f32)
    else:
        z = jnp.maximum(t, 0.0)
        u = x.astype(jnp.float32)                    # identity shortcut

    # z = relu(z @ W2 + b2)
    z = jnp.dot(z.astype(w2_ref.dtype), w2_ref[...],
                preferred_element_type=jnp.float32) + b2_ref[...]
    z = jnp.maximum(z, 0.0)

    out_ref[...] = (z + u).astype(out_ref.dtype)


def residual_block(x, w1, b1, w2, b2, wproj=None, bproj=None, *,
                   block_batch=1024,
                   compute_dtype=jnp.bfloat16,
                   out_dtype=jnp.bfloat16):
    """Pallas forward of ResidualBlock.  Weights are (in, out); biases (out,)."""
    batch, in_d = x.shape
    out_d = w1.shape[1]
    has_proj = wproj is not None
    assert has_proj or in_d == out_d, "identity shortcut requires in_d == out_d"

    # Batch tile: large (amortizes per-step overhead), sublane-aligned when the
    # batch is tiled.  The last grid block may be ragged; Pallas masks it.
    tb = min(block_batch, batch)
    if tb < batch:
        tb = max(8, (tb // 8) * 8)
    grid = (pl.cdiv(batch, tb),)

    # One-time casts in the wrapper: bf16 activations + bf16 weights, f32 biases.
    x_c = x.astype(compute_dtype)
    w2c = w2.astype(compute_dtype)
    b2r = jnp.asarray(b2, jnp.float32).reshape(1, out_d)
    if has_proj:
        # Fuse the two shared-LHS matmuls: one (in_d, 2*out_d) weight.
        w1c = jnp.concatenate([w1, wproj], axis=1).astype(compute_dtype)
        b1r = jnp.concatenate(
            [jnp.asarray(b1, jnp.float32), jnp.asarray(bproj, jnp.float32)]
        ).reshape(1, 2 * out_d)
    else:
        w1c = w1.astype(compute_dtype)
        b1r = jnp.asarray(b1, jnp.float32).reshape(1, out_d)

    def resident(shape):
        # Constant block index => operand stays VMEM-resident across grid steps.
        return pl.BlockSpec(shape, lambda i: (0,) * len(shape))

    in_specs = [pl.BlockSpec((tb, in_d), lambda i: (i, 0)),   # x: tiled over batch
                resident(w1c.shape), resident(b1r.shape),
                resident(w2c.shape), resident(b2r.shape)]

    # VMEM budget (counts pipeline buffers, resident weights AND f32 temporaries;
    # relevant on v7x's 64 MiB).  Never request less than the 32 MiB default.
    cd_b = jnp.dtype(compute_dtype).itemsize
    out_b = jnp.dtype(out_dtype).itemsize
    wide = 2 * out_d if has_proj else out_d
    est = (2 * tb * in_d * cd_b              # double-buffered x tiles
           + 2 * tb * out_d * out_b          # double-buffered out tiles
           + (w1c.size + w2c.size) * cd_b    # resident bf16 weights
           + (b1r.size + b2r.size) * 4       # resident f32 biases
           + 3 * tb * wide * 4)              # f32 intermediates (t, z, z+u)
    vmem_limit = max(32 << 20, min(2 * est + (4 << 20), 60 << 20))

    out = pl.pallas_call(
        functools.partial(_residual_block_kernel, has_proj),
        out_shape=jax.ShapeDtypeStruct((batch, out_d), out_dtype),
        grid=grid,
        in_specs=in_specs,
        out_specs=pl.BlockSpec((tb, out_d), lambda i: (i, 0)),
        compiler_params=pltpu.CompilerParams(
            dimension_semantics=("parallel",),
            vmem_limit_bytes=int(vmem_limit)),
    )(x_c, w1c, b1r, w2c, b2r)
    return out


# ----------------------------- references -----------------------------------

def reference_f32(x, w1, b1, w2, b2, wproj=None, bproj=None):
    """Pure-f32 forward (exactly the PyTorch module math)."""
    z = jnp.maximum(x @ w1 + b1, 0.0)
    z = jnp.maximum(z @ w2 + b2, 0.0)
    u = x if wproj is None else x @ wproj + bproj
    return z + u


def reference_kernel_numerics(x, w1, b1, w2, b2, wproj=None, bproj=None,
                              out_dtype=jnp.bfloat16):
    """Same math with the kernel's numerics: bf16 inputs/weights on the MXU,
    f32 accumulation + f32 elementwise, bf16 residual input, out_dtype store."""
    xb = x.astype(jnp.bfloat16)

    def dot(a, b):
        return jnp.dot(a.astype(jnp.bfloat16), b.astype(jnp.bfloat16),
                       preferred_element_type=jnp.float32)

    z = jnp.maximum(dot(xb, w1) + b1, 0.0)
    z = jnp.maximum(dot(z, w2) + b2, 0.0)
    u = xb.astype(jnp.float32) if wproj is None else dot(xb, wproj) + bproj
    return (z + u).astype(out_dtype)


# ------------------------------- demo ----------------------------------------

if __name__ == "__main__":
    batch, in_d, out_d = 512, 64, 128     # out_d multiple of 128 -> lane-dense stores
    tb = 256                               # several grid steps in the demo

    key = jax.random.PRNGKey(0)
    k = jax.random.split(key, 8)

    x = jax.random.normal(k[0], (batch, in_d), dtype=jnp.float32)
    w1 = 0.1 * jax.random.normal(k[1], (in_d, out_d), dtype=jnp.float32)
    b1 = 0.1 * jax.random.normal(k[2], (out_d,), dtype=jnp.float32)
    w2 = 0.1 * jax.random.normal(k[3], (out_d, out_d), dtype=jnp.float32)
    b2 = 0.1 * jax.random.normal(k[4], (out_d,), dtype=jnp.float32)
    wp = 0.1 * jax.random.normal(k[5], (in_d, out_d), dtype=jnp.float32)
    bp = 0.1 * jax.random.normal(k[6], (out_d,), dtype=jnp.float32)

    # Case 1: in_d != out_d  -> fused [W1|Wp] proj shortcut, batch divisible by tile.
    out1 = residual_block(x, w1, b1, w2, b2, wp, bp, block_batch=tb)
    out1 = jax.block_until_ready(out1)
    ref1 = reference_kernel_numerics(x, w1, b1, w2, b2, wp, bp)
    ref1_f32 = reference_f32(x, w1, b1, w2, b2, wp, bp)
    assert out1.shape == (batch, out_d) and out1.dtype == jnp.bfloat16
    assert jnp.allclose(out1.astype(jnp.float32), ref1.astype(jnp.float32),
                        atol=1.5e-2, rtol=1.5e-2), "mismatch vs kernel-numerics ref (proj path)"
    assert jnp.allclose(out1.astype(jnp.float32), ref1_f32,
                        atol=1e-1, rtol=1e-1), "mismatch vs f32 ref (proj path)"

    # Case 2: in_d == out_d -> identity shortcut, RAGGED batch (no pad / no slice
    # in the wrapper; last grid block is masked by Pallas).
    batch2 = 500
    x2 = jax.random.normal(k[7], (batch2, out_d), dtype=jnp.float32)
    w1b = 0.1 * jax.random.normal(k[1], (out_d, out_d), dtype=jnp.float32)
    out2 = residual_block(x2, w1b, b1, w2, b2, block_batch=tb)
    out2 = jax.block_until_ready(out2)
    ref2 = reference_kernel_numerics(x2, w1b, b1, w2, b2)
    ref2_f32 = reference_f32(x2, w1b, b1, w2, b2)
    assert out2.shape == (batch2, out_d) and out2.dtype == jnp.bfloat16
    assert jnp.allclose(out2.astype(jnp.float32), ref2.astype(jnp.float32),
                        atol=1.5e-2, rtol=1.5e-2), "mismatch vs kernel-numerics ref (identity path)"
    assert jnp.allclose(out2.astype(jnp.float32), ref2_f32,
                        atol=1e-1, rtol=1e-1), "mismatch vs f32 ref (identity path)"

    print("KERNEL_OK")
</pallas_src>

<mosaic_0001>
module attributes {stable_mosaic.version = 11 : i64} {
  func.func @_residual_block_kernel(%arg0: i32, %arg1: memref<256x64xbf16, #tpu.memory_space<vmem>>, %arg2: memref<64x256xbf16, #tpu.memory_space<vmem>>, %arg3: memref<1x256xf32, #tpu.memory_space<vmem>>, %arg4: memref<128x128xbf16, #tpu.memory_space<vmem>>, %arg5: memref<1x128xf32, #tpu.memory_space<vmem>>, %arg6: memref<256x128xbf16, #tpu.memory_space<vmem>>) attributes {dimension_semantics = [#tpu.dimension_semantics<parallel>], iteration_bounds = array<i64: 2>, scalar_prefetch = 0 : i64, scratch_operands = 0 : i64, tpu.core_type = #tpu.core_type<tc>, window_params = [{transform_indices = @transform_0, window_bounds = array<i64: 256, 64>}, {pipeline_mode = #tpu.pipeline_mode<synchronous>, transform_indices = @transform_1, window_bounds = array<i64: 64, 256>}, {pipeline_mode = #tpu.pipeline_mode<synchronous>, transform_indices = @transform_2, window_bounds = array<i64: 1, 256>}, {pipeline_mode = #tpu.pipeline_mode<synchronous>, transform_indices = @transform_3, window_bounds = array<i64: 128, 128>}, {pipeline_mode = #tpu.pipeline_mode<synchronous>, transform_indices = @transform_4, window_bounds = array<i64: 1, 128>}, {transform_indices = @transform_5, window_bounds = array<i64: 256, 128>}]} {
    %c0 = arith.constant 0 : index
    %c0_0 = arith.constant 0 : index
    %0 = vector.load %arg1[%c0, %c0_0] : memref<256x64xbf16, #tpu.memory_space<vmem>>, vector<256x64xbf16>
    %c0_1 = arith.constant 0 : index
    %c0_2 = arith.constant 0 : index
    %1 = vector.load %arg2[%c0_1, %c0_2] : memref<64x256xbf16, #tpu.memory_space<vmem>>, vector<64x256xbf16>
    %cst = arith.constant dense<0.000000e+00> : vector<256x256xf32>
    %2 = tpu.matmul %0, %1, %cst {dimension_numbers = #tpu.dot_dimension_numbers<[1], [0], [0], [1], [0, 0, 1, 1], [], []>} : vector<256x64xbf16>, vector<64x256xbf16>, vector<256x256xf32> -> vector<256x256xf32>
    %c0_3 = arith.constant 0 : index
    %c0_4 = arith.constant 0 : index
    %3 = vector.load %arg3[%c0_3, %c0_4] : memref<1x256xf32, #tpu.memory_space<vmem>>, vector<1x256xf32>
    %4 = vector.broadcast %3 : vector<1x256xf32> to vector<256x256xf32>
    %5 = arith.addf %2, %4 : vector<256x256xf32>
    %6 = vector.extract_strided_slice %5 {offsets = [0, 0], sizes = [256, 128], strides = [1, 1]} : vector<256x256xf32> to vector<256x128xf32>
    %cst_5 = arith.constant 0.000000e+00 : f32
    %7 = vector.broadcast %cst_5 : f32 to vector<256x128xf32>
    %8 = arith.maximumf %6, %7 : vector<256x128xf32>
    %9 = vector.extract_strided_slice %5 {offsets = [0, 128], sizes = [256, 128], strides = [1, 1]} : vector<256x256xf32> to vector<256x128xf32>
    %10 = arith.truncf %8 : vector<256x128xf32> to vector<256x128xbf16>
    %c0_6 = arith.constant 0 : index
    %c0_7 = arith.constant 0 : index
    %11 = vector.load %arg4[%c0_6, %c0_7] : memref<128x128xbf16, #tpu.memory_space<vmem>>, vector<128x128xbf16>
    %cst_8 = arith.constant dense<0.000000e+00> : vector<256x128xf32>
    %12 = tpu.matmul %10, %11, %cst_8 {dimension_numbers = #tpu.dot_dimension_numbers<[1], [0], [0], [1], [0, 0, 1, 1], [], []>} : vector<256x128xbf16>, vector<128x128xbf16>, vector<256x128xf32> -> vector<256x128xf32>
    %c0_9 = arith.constant 0 : index
    %c0_10 = arith.constant 0 : index
    %13 = vector.load %arg5[%c0_9, %c0_10] : memref<1x128xf32, #tpu.memory_space<vmem>>, vector<1x128xf32>
    %14 = vector.broadcast %13 : vector<1x128xf32> to vector<256x128xf32>
    %15 = arith.addf %12, %14 : vector<256x128xf32>
    %cst_11 = arith.constant 0.000000e+00 : f32
    %16 = vector.broadcast %cst_11 : f32 to vector<256x128xf32>
    %17 = arith.maximumf %15, %16 : vector<256x128xf32>
    %18 = arith.addf %17, %9 : vector<256x128xf32>
    %19 = arith.truncf %18 : vector<256x128xf32> to vector<256x128xbf16>
    %c0_12 = arith.constant 0 : index
    %c0_13 = arith.constant 0 : index
    %20 = vector.load %arg6[%c0_12, %c0_13] : memref<256x128xbf16, #tpu.memory_space<vmem>>, vector<256x128xbf16>
    tpu.vector_store %arg6[%c0_12, %c0_13], %19 {strides = array<i32>} : memref<256x128xbf16, #tpu.memory_space<vmem>>, vector<256x128xbf16>,
    return
  }
  func.func @transform_0(%arg0: i32) -> (i32, i32) {
    %c0_i32 = arith.constant 0 : i32
    %c0_i32_0 = arith.constant 0 : i32
    return %arg0, %c0_i32 : i32, i32
  }
  func.func @transform_1(%arg0: i32) -> (i32, i32) {
    %c0_i32 = arith.constant 0 : i32
    %c0_i32_0 = arith.constant 0 : i32
    %c0_i32_1 = arith.constant 0 : i32
    return %c0_i32, %c0_i32_0 : i32, i32
  }
  func.func @transform_2(%arg0: i32) -> (i32, i32) {
    %c0_i32 = arith.constant 0 : i32
    %c0_i32_0 = arith.constant 0 : i32
    %c0_i32_1 = arith.constant 0 : i32
    return %c0_i32, %c0_i32_0 : i32, i32
  }
  func.func @transform_3(%arg0: i32) -> (i32, i32) {
    %c0_i32 = arith.constant 0 : i32
    %c0_i32_0 = arith.constant 0 : i32
    %c0_i32_1 = arith.constant 0 : i32
    return %c0_i32, %c0_i32_0 : i32, i32
  }
  func.func @transform_4(%arg0: i32) -> (i32, i32) {
    %c0_i32 = arith.constant 0 : i32
    %c0_i32_0 = arith.constant 0 : i32
    %c0_i32_1 = arith.constant 0 : i32
    return %c0_i32, %c0_i32_0 : i32, i32
  }
  func.func @transform_5(%arg0: i32) -> (i32, i32) {
    %c0_i32 = arith.constant 0 : i32
    %c0_i32_0 = arith.constant 0 : i32
    return %arg0, %c0_i32 : i32, i32
  }
}

</mosaic_0001>

<bundles_post_ra>
// kernel: tpu_custom_call.1
= control target key start
LH: loop header
LB: loop body
LE: loop exit
PB: predicated region body
PF: predicated region fallthrough
CT: control target
= control target key end

     0   :  { %10 = vsyncpa [#allocation3], 0  ;;  %s2145_s0 = inlined_call_operand.vmem [shape: bf16[512,64], index: 0, kind: input, shape index: {}]   ;;  %s2146_s1 = inlined_call_operand.vmem [shape: bf16[64,256], index: 1, kind: input, shape index: {}]   ;;  %s2147_s2 = inlined_call_operand.vmem [shape: f32[1,256], index: 2, kind: input, shape index: {}]   ;;  %s2148_s3 = inlined_call_operand.vmem [shape: bf16[128,128], index: 3, kind: input, shape index: {}]   ;;  %s2149_s4 = inlined_call_operand.vmem [shape: f32[1,128], index: 4, kind: input, shape index: {}]   ;;  %s2150_s5 = inlined_call_operand.hbm [shape: bf16[512,128], index: 5, kind: output, shape index: {}]  }
   0x1   :  { %12 = vsyncpa [#allocation3 + $0x1], 0  ;;  %s1698_s18 = smov 0   ;;  %s1700_s19 = smov 0  }
   0x2   :  { %s1702_s20 = smov 0   ;;  %s1704_s21 = smov 0  }
   0x3 LB: > { %s1719_s22 = sadd.s32 4294967295, %s1662_s21   ;;  %s1221_s23 = sadd.s32 4294967294, %s1662_s21   ;;  %s1662_s21 = sphi %s1704_s21, %s2156_s21   ;;  %s1658_s20 = sphi %s1702_s20, %s2155_s20   ;;  %s1654_s19 = sphi %s1700_s19, %s2154_s19   ;;  %s1650_s18 = sphi %s1698_s18, %s2153_s18  }
   0x4   : > { %s1723_s24 = sadd.s32 1, %s1662_s21   ;;  %s135_s25 = sadd.s32 1, %s1658_s20 }
   0x5   : > { %s132_s26 = ssub.s32 %s1662_s21, %s1723_s24  ;;  %p145_p0 = scmp.ne.s32.totalorder %s1658_s20, %s1654_s19 }
   0x6   : > { %p133_p1 = scmp.eq.s32.totalorder %s132_s26, 0  ;;  %p146_p2 = scmp.eq.s32.totalorder %s1719_s22, 1 }
   0x7   : > { %p151_p3 = scmp.ne.s32.totalorder %s1654_s19, %s1650_s18  ;;  %p152_p4 = scmp.eq.s32.totalorder %s1221_s23, 1 }
   0x8   : > { %s1734_s27 = scalar_select %p133_p1, %s1658_s20, %s135_s25  }
   0x9   : > { %p1736_p5 = por %p146_p2, %p145_p0  ;;  %p1740_p6 = por %p152_p4, %p151_p3 }
   0xa   : > { %p1224_p7 = scmp.ge.s32.totalorder %s1662_s21, 1  ;;  %p191_p8 = scmp.lt.s32.totalorder %s1662_s21, 3 }
   0xc   : > { %p192_p9 = pnand %p1224_p7, %p191_p8 }
   0xd   : > { %v1564_v0 = vld [vmem:[%s2146_s1 + $0x4] ss:$8 sps:$4 sm:$0xff] (!%p192_p9)   ;;  %s1226_s7 = sshll.u32 (!%p192_p9), %s1719_s22, 5  ;;  %v1566_v1 = vld [vmem:[%s2146_s1] ss:$8 sps:$4 sm:$0xff] (!%p192_p9)   ;;  %v1664_v2 = vmov (!%p192_p9), 0   ;;  %v269_v33 = vlaneseq (!%p192_p9) }
   0xe   : > { %195 = sbr.rel (%p192_p9) target bundleno = 593 (0x251), region = 40  ;;  %480 = vmatprep.mubr.bf16.mxu0 (!%p192_p9), %v1664_v2  ;;  %p220_p10 = scmp.lt.s32.totalorder (!%p192_p9), %s1226_s7, 63  ;;  %600 = vmatprep.mubr.bf16.mxu1 (!%p192_p9), %v1664_v2  ;;  %v1567_v3 = vld [vmem:[%s2146_s1 + $0x14] ss:$8 sps:$4 sm:$0xff] (!%p192_p9)   ;;  %v1569_v4 = vld [vmem:[%s2146_s1 + $0x10] ss:$8 sps:$4 sm:$0xff] (!%p192_p9)  }
   0xf   : > { %448 = vmatprep.subr.bf16.mxu0 (!%p192_p9), %v1564_v0  ;;  %1514 = vmatprep.subr.bf16.mxu1 (!%p192_p9), %v1564_v0  ;;  %v1570_v5 = vld [vmem:[%s2146_s1 + $0x24] ss:$8 sps:$4 sm:$0xff] (!%p192_p9)   ;;  %v1572_v6 = vld [vmem:[%s2146_s1 + $0x20] ss:$8 sps:$4 sm:$0xff] (!%p192_p9)   ;;  %v1573_v7 = vld [vmem:[%s2146_s1 + $0x34] ss:$8 sps:$4 sm:$0xff] (!%p192_p9)  }
  0x10   : > { %449 = vmatpush1.bf16.msra.mxu0 (!%p192_p9), %v1566_v1  ;;  %1518 = vmatpush1.bf16.msra.mxu1 (!%p192_p9), %v1566_v1  ;;  %v1575_v8 = vld [vmem:[%s2146_s1 + $0x30] ss:$8 sps:$4 sm:$0xff] (!%p192_p9)   ;;  %v1592_v9 = vld [vmem:[%s2148_s3] sm:$0xff] (!%p192_p9)   ;;  %vm399_vm0 = vcmask (!%p192_p9), 523264   ;;  %v1593_v14 = vld [vmem:[%s2148_s3 + $0x8] sm:$0xff] (!%p192_p9)   ;;  %v1848_v34 = vshrl.u32 (!%p192_p9), %v269_v33, 7 }
  0x11   : > { %450 = vmatprep.subr.bf16.mxu0 (!%p192_p9), %v1567_v3  ;;  %1515 = vmatprep.subr.bf16.mxu1 (!%p192_p9), %v1567_v3  ;;  %v1594_v15 = vld [vmem:[%s2148_s3 + $0x10] sm:$0xff] (!%p192_p9)   ;;  %v1595_v16 = vld [vmem:[%s2148_s3 + $0x18] sm:$0xff] (!%p192_p9)   ;;  %v1596_v28 = vld [vmem:[%s2148_s3 + $0x20] sm:$0xff] (!%p192_p9)   ;;  %s216_s14 = sand.u32 (!%p192_p9), 1, %s1654_s19   ;;  %s1346_s17 = sshll.u32 (!%p192_p9), %s1719_s22, 11 }
  0x12   : > { %v1597_v30 = vld [vmem:[%s2148_s3 + $0x28] sm:$0xff] (!%p192_p9)   ;;  %v1598_v31 = vld [vmem:[%s2148_s3 + $0x30] sm:$0xff] (!%p192_p9)   ;;  %v1599_v32 = vld [vmem:[%s2148_s3 + $0x38] sm:$0xff] (!%p192_p9)   ;;  %v271_v35 = vsub.s32 (!%p192_p9), 0, %v1848_v34  ;;  %s1225_s15 = sshll.u32 (!%p192_p9), %s216_s14, 7  ;;  %s2096_s6 = scalar_lea.hbm (!%p192_p9), %s2150_s5, %s1346_s17 }
  0x13   : > { %v1854_v36 = vld [vmem:[%s2147_s2] sm:$0x3] (!%p192_p9)  ;;  %s2104_s8 = scalar_lea.sflag (!%p192_p9), [#allocation3], %s216_s14 }
  0x14   : > { %451 = vmatpush1.bf16.msra.mxu0 (!%p192_p9), %v1569_v4  ;;  %1519 = vmatpush1.bf16.msra.mxu1 (!%p192_p9), %v1569_v4  ;;  %v1857_v37 = vrot.slane (!%p192_p9), %v1854_v36, %v271_v35 }
  0x15   : > { %s2158_s7 = smov (!%p220_p10, %s1226_s7), 63  ;;  %452 = vmatprep.subr.bf16.mxu0 %v1570_v5  ;;  %1516 = vmatprep.subr.bf16.mxu1 %v1570_v5 }
  0x16   : > { %s1227_s16 = sshll.u32 %s2158_s7, 2  ;;  %s1665_s7 = smov [#allocation2]  }
  0x17   : > { %s1767_s25 = scalar_lea.vmem %s2145_s0, %s1227_s16  ;;  %s1991_s16 = scalar_lea.vmem [#allocation2], %s1225_s15 }
  0x18   : > { %453 = vmatpush1.bf16.msra.mxu0 %v1572_v6  ;;  %1520 = vmatpush1.bf16.msra.mxu1 %v1572_v6  ;;  %v1576_v10 = vld [vmem:[%s1767_s25] sm:$0xff]   ;;  %v1577_v12 = vld [vmem:[%s1767_s25 + $0x8] sm:$0xff]   ;;  %v1578_v17 = vld [vmem:[%s1767_s25 + $0x10] sm:$0xff]   ;;  %s1159_s23 = sshll.u32 %s1991_s16, 4  ;;  %s1604_s9 = sshll.u32 %s1665_s7, 4  ;;  %s2098_s23 = int_to_ptr.vmem [resolvable:$true] %s1159_s23  ;;  %s1605_s9 = int_to_ptr.vmem [resolvable:$false] %s1604_s9 }
  0x19   : > { %454 = vmatprep.subr.bf16.mxu0 %v1573_v7  ;;  %1517 = vmatprep.subr.bf16.mxu1 %v1573_v7  ;;  %v1586_v11 = vld [vmem:[%s1767_s25 + $0x60] sm:$0xff]   ;;  %v1588_v13 = vld [vmem:[%s1767_s25 + $0x68] sm:$0xff]   ;;  %v1590_v18 = vld [vmem:[%s1767_s25 + $0x70] sm:$0xff]   ;;  %s1600_s22 = scalar_lea.vmem %s2098_s23, 2048  ;;  %s1606_s10 = scalar_lea.vmem %s1605_s9, 4096 }
  0x1a   : > { %v1579_v19 = vld [vmem:[%s1767_s25 + $0x18] sm:$0xff]   ;;  %v1580_v21 = vld [vmem:[%s1767_s25 + $0x20] sm:$0xff]   ;;  %v1581_v22 = vld [vmem:[%s1767_s25 + $0x28] sm:$0xff]   ;;  %p1601_p11 = scmp.ne.s32.totalorder %s2098_s23, %s1600_s22  ;;  %p1607_p0 = scmp.lt.s32.totalorder %s2098_s23, %s1605_s9 }
  0x1b   : > { %v1591_v20 = vld [vmem:[%s1767_s25 + $0x78] sm:$0xff]   ;;  %v1582_v23 = vld [vmem:[%s1767_s25 + $0x30] sm:$0xff]   ;;  %v1584_v25 = vld [vmem:[%s1767_s25 + $0x40] sm:$0xff]   ;;  %p1608_p1 = scmp.lt.s32.totalorder %s1606_s10, %s1600_s22 }
  0x1c   : > { %455 = vmatpush1.bf16.msra.mxu0 %v1575_v8  ;;  %1521 = vmatpush1.bf16.msra.mxu1 %v1575_v8  ;;  %v1583_v24 = vld [vmem:[%s1767_s25 + $0x38] sm:$0xff]   ;;  %v1585_v26 = vld [vmem:[%s1767_s25 + $0x48] sm:$0xff]   ;;  %v1587_v27 = vld [vmem:[%s1767_s25 + $0x50] sm:$0xff]   ;;  %p1602_p12 = pnand %p1601_p11, %p1736_p5 }
  0x1d   : > { %1466 = vmatprep.subr.bf16.mxu1 %v1592_v9  ;;  %v1589_v29 = vld [vmem:[%s1767_s25 + $0x58] sm:$0xff]   ;;  %p1609_p2 = por %p1608_p1, %p1607_p0 }
  0x1e   : > { %p1603_p13 = pneg %p1602_p12 }
  0x1f   : > { %1252 = vmatmul.mubr.msk.bf16.vlgmr.msra.gmra.mrb[0].mxu0 %vm399_vm0, %v1576_v10  ;;  %1264 = vmatmul.mubr.msk.bf16.vlgmr.msra.gmra.mrb[0].mxu1 %vm399_vm0, %v1586_v11 }
  0x20   : > { %490 = vmatprep.mubr.bf16.mxu0 %v1664_v2  ;;  %610 = vmatprep.mubr.bf16.mxu1 %v1664_v2  ;;  %p1610_p3 = pnand %p1609_p2, %p1603_p13 }
  0x21   : > { %1467 = vmatpush3.bf16.msra.mxu1 %v1592_v9 }
  0x22   : > { %1468 = vmatprep.subr.bf16.mxu1 %v1593_v14 }
  0x25   : > { %1469 = vmatpush3.bf16.msra.mxu1 %v1593_v14 }
  0x26   : > { %1470 = vmatprep.subr.bf16.mxu1 %v1594_v15 }
  0x27   : > { %1253 = vmatmul.mubr.msk.bf16.gmra.mrb[4].mxu0 %vm399_vm0, %v1577_v12  ;;  %1265 = vmatmul.mubr.msk.bf16.gmra.mrb[4].mxu1 %vm399_vm0, %v1588_v13 }
  0x28   : > { %500 = vmatprep.mubr.bf16.mxu0 %v1664_v2  ;;  %620 = vmatprep.mubr.bf16.mxu1 %v1664_v2 }
  0x29   : > { %1471 = vmatpush3.bf16.msra.mxu1 %v1594_v15 }
  0x2a   : > { %1472 = vmatprep.subr.bf16.mxu1 %v1595_v16 }
  0x2d   : > { %1473 = vmatpush3.bf16.msra.mxu1 %v1595_v16 }
  0x2e   : > { %1474 = vmatprep.subr.bf16.mxu1 %v1596_v28 }
  0x2f   : > { %1254 = vmatmul.mubr.msk.bf16.gmra.mrb[8].mxu0 %vm399_vm0, %v1578_v17  ;;  %1266 = vmatmul.mubr.msk.bf16.gmra.mrb[8].mxu1 %vm399_vm0, %v1590_v18 }
  0x30   : > { %510 = vmatprep.mubr.bf16.mxu0 %v1664_v2  ;;  %630 = vmatprep.mubr.bf16.mxu1 %v1664_v2 }
  0x31   : > { %1475 = vmatpush3.bf16.msra.mxu1 %v1596_v28 }
  0x32   : > { %1476 = vmatprep.subr.bf16.mxu1 %v1597_v30 }
  0x35   : > { %1477 = vmatpush3.bf16.msra.mxu1 %v1597_v30 }
  0x36   : > { %1478 = vmatprep.subr.bf16.mxu1 %v1598_v31 }
  0x37   : > { %1255 = vmatmul.mubr.msk.bf16.gmra.mrb[12].mxu0 %vm399_vm0, %v1579_v19  ;;  %1267 = vmatmul.mubr.msk.bf16.gmra.mrb[12].mxu1 %vm399_vm0, %v1591_v20 }
  0x38   : > { %520 = vmatprep.mubr.bf16.mxu0 %v1664_v2 }
  0x39   : > { %1479 = vmatpush3.bf16.msra.mxu1 %v1598_v31 }
  0x3a   : > { %1480 = vmatprep.subr.bf16.mxu1 %v1599_v32 }
  0x3d   : > { %1481 = vmatpush3.bf16.msra.mxu1 %v1599_v32 }
  0x3f   : > { %1256 = vmatmul.mubr.msk.bf16.gmra.mrb[16].mxu0 %vm399_vm0, %v1580_v21 }
  0x40   : > { %530 = vmatprep.mubr.bf16.mxu0 %v1664_v2 }
  0x47   : > { %1257 = vmatmul.mubr.msk.bf16.gmra.mrb[20].mxu0 %vm399_vm0, %v1581_v22 }
  0x48   : > { %540 = vmatprep.mubr.bf16.mxu0 %v1664_v2 }
  0x4f   : > { %1258 = vmatmul.mubr.msk.bf16.gmra.mrb[24].mxu0 %vm399_vm0, %v1582_v23 }
  0x50   : > { %550 = vmatprep.mubr.bf16.mxu0 %v1664_v2 }
  0x57   : > { %1259 = vmatmul.mubr.msk.bf16.gmra.mrb[28].mxu0 %vm399_vm0, %v1583_v24 }
  0x58   : > { %560 = vmatprep.mubr.bf16.mxu0 %v1664_v2 }
  0x5f   : > { %1260 = vmatmul.mubr.msk.bf16.gmra.mrb[32].mxu0 %vm399_vm0, %v1584_v25 }
  0x60   : > { %570 = vmatprep.mubr.bf16.mxu0 %v1664_v2 }
  0x67   : > { %1261 = vmatmul.mubr.msk.bf16.gmra.mrb[36].mxu0 %vm399_vm0, %v1585_v26 }
  0x68   : > { %580 = vmatprep.mubr.bf16.mxu0 %v1664_v2 }
  0x6f   : > { %1262 = vmatmul.mubr.msk.bf16.gmra.mrb[40].mxu0 %vm399_vm0, %v1587_v27 }
  0x70   : > { %590 = vmatprep.mubr.bf16.mxu0 %v1664_v2 }
  0x77   : > { %1263 = vmatmul.mubr.msk.bf16.gmra.mrb[44].mxu0 %vm399_vm0, %v1589_v29 }
  0xf2   : > { %v482_v38 = vpop.f32.mrb[0].mxu0  ;;  %v602_v41 = vpop.f32.mrb[0].mxu1 }
  0xf3   : > { %v483_v39 = vadd.f32 %v482_v38, %v1857_v37  ;;  %v1860_v40 = vpop.f32.mrb[1].mxu0  ;;  %v603_v43 = vadd.f32 %v602_v41, %v1857_v37  ;;  %v1863_v44 = vpop.f32.mrb[1].mxu1 }
  0xf4   : > { %v486_v42 = vpop.f32.mrb[2].mxu0  ;;  %v606_v47 = vpop.f32.mrb[2].mxu1 }
  0xf5   : > { %v487_v45 = vadd.f32 %v486_v42, %v1857_v37  ;;  %v1866_v46 = vpop.f32.mrb[3].mxu0  ;;  %v665_v48 = vmax.f32 %v603_v43, 0.0  ;;  %v607_v49 = vadd.f32 %v606_v47, %v1857_v37  ;;  %v1869_v50 = vpop.f32.mrb[3].mxu1  ;;  %v641_v51 = vmax.f32 %v483_v39, 0.0 }
  0xf7   : > { %v642_v52 = vmax.f32 %v487_v45, 0.0  ;;  %v666_v53 = vmax.f32 %v607_v49, 0.0 }
  0xf9   : > { %v673_v54 = vpack.c.bf16 %v642_v52, %v641_v51  ;;  %v1871_v56 = vpack.c.bf16 %v666_v53, %v665_v48 }
  0xfa   : > { %v492_v55 = vpop.f32.mrb[4].mxu0  ;;  %v612_v59 = vpop.f32.mrb[4].mxu1 }
  0xfb   : > { %v493_v57 = vadd.f32 %v492_v55, %v1857_v37  ;;  %v1874_v58 = vpop.f32.mrb[5].mxu0  ;;  %1482 = vmatprep.mubr.bf16.mxu1 %v673_v54  ;;  %v613_v61 = vadd.f32 %v612_v59, %v1857_v37  ;;  %v1877_v62 = vpop.f32.mrb[5].mxu1 }
  0xfc   : > { %v496_v60 = vpop.f32.mrb[6].mxu0  ;;  %v616_v1 = vpop.f32.mrb[6].mxu1 }
  0xfd   : > { %v497_v63 = vadd.f32 %v496_v60, %v1857_v37  ;;  %v1880_v0 = vpop.f32.mrb[7].mxu0  ;;  %v667_v2 = vmax.f32 %v613_v61, 0.0  ;;  %v617_v3 = vadd.f32 %v616_v1, %v1857_v37  ;;  %v1883_v4 = vpop.f32.mrb[7].mxu1  ;;  %v643_v5 = vmax.f32 %v493_v57, 0.0 }
  0xff   : > { %v644_v6 = vmax.f32 %v497_v63, 0.0  ;;  %v668_v7 = vmax.f32 %v617_v3, 0.0 }
 0x101   : > { %v674_v8 = vpack.c.bf16 %v644_v6, %v643_v5  ;;  %v1885_v10 = vpack.c.bf16 %v668_v7, %v667_v2 }
 0x102   : > { %v502_v9 = vpop.f32.mrb[8].mxu0  ;;  %v622_v13 = vpop.f32.mrb[8].mxu1 }
 0x103   : > { %v503_v11 = vadd.f32 %v502_v9, %v1857_v37  ;;  %v1888_v12 = vpop.f32.mrb[9].mxu0  ;;  %1483 = vmatmul.mubr.bf16.vlgmr.msra.gmra.mrb[16].mxu1 %v674_v8  ;;  %v623_v15 = vadd.f32 %v622_v13, %v1857_v37  ;;  %v1891_v16 = vpop.f32.mrb[9].mxu1 }
 0x104   : > { %v506_v14 = vpop.f32.mrb[10].mxu0  ;;  %v626_v19 = vpop.f32.mrb[10].mxu1 }
 0x105   : > { %v507_v17 = vadd.f32 %v506_v14, %v1857_v37  ;;  %v1894_v18 = vpop.f32.mrb[11].mxu0  ;;  %v669_v20 = vmax.f32 %v623_v15, 0.0  ;;  %v627_v21 = vadd.f32 %v626_v19, %v1857_v37  ;;  %v1897_v22 = vpop.f32.mrb[11].mxu1  ;;  %v645_v23 = vmax.f32 %v503_v11, 0.0 }
 0x107   : > { %v646_v24 = vmax.f32 %v507_v17, 0.0  ;;  %v670_v25 = vmax.f32 %v627_v21, 0.0 }
 0x109   : > { %v675_v26 = vpack.c.bf16 %v646_v24, %v645_v23  ;;  %v1899_v28 = vpack.c.bf16 %v670_v25, %v669_v20 }
 0x10a   : > { %v512_v27 = vpop.f32.mrb[12].mxu0  ;;  %v632_v31 = vpop.f32.mrb[12].mxu1 }
 0x10b   : > { %v513_v29 = vadd.f32 %v512_v27, %v1857_v37  ;;  %v1902_v30 = vpop.f32.mrb[13].mxu0  ;;  %1486 = vmatprep.mubr.bf16.mxu1 %v675_v26  ;;  %v633_v33 = vadd.f32 %v632_v31, %v1857_v37  ;;  %v1905_v35 = vpop.f32.mrb[13].mxu1 }
 0x10c   : > { %v516_v32 = vpop.f32.mrb[14].mxu0  ;;  %v636_v41 = vpop.f32.mrb[14].mxu1 }
 0x10d   : > { %v517_v38 = vadd.f32 %v516_v32, %v1857_v37  ;;  %v1908_v39 = vpop.f32.mrb[15].mxu0  ;;  %v671_v42 = vmax.f32 %v633_v33, 0.0  ;;  %v637_v43 = vadd.f32 %v636_v41, %v1857_v37  ;;  %v1911_v45 = vpop.f32.mrb[15].mxu1  ;;  %v647_v47 = vmax.f32 %v513_v29, 0.0 }
 0x10f   : > { %v648_v48 = vmax.f32 %v517_v38, 0.0  ;;  %v672_v49 = vmax.f32 %v637_v43, 0.0 }
 0x111   : > { %v676_v51 = vpack.c.bf16 %v648_v48, %v647_v47  ;;  %v1913_v53 = vpack.c.bf16 %v672_v49, %v671_v42 }
 0x112   : > { %v522_v52 = vpop.f32.mrb[16].mxu0 }
 0x113   : > { %v523_v54 = vadd.f32 %v522_v52, %v1857_v37  ;;  %v1916_v55 = vpop.f32.mrb[17].mxu0  ;;  %1487 = vmatmul.mubr.bf16.gmra.mrb[20].mxu1 %v676_v51 }
 0x114   : > { %v526_v57 = vpop.f32.mrb[18].mxu0 }
 0x115   : > { %v527_v59 = vadd.f32 %v526_v57, %v1857_v37  ;;  %v1919_v60 = vpop.f32.mrb[19].mxu0  ;;  %v649_v61 = vmax.f32 %v523_v54, 0.0 }
 0x117   : > { %v650_v63 = vmax.f32 %v527_v59, 0.0 }
 0x119   : > { %v677_v1 = vpack.c.bf16 %v650_v63, %v649_v61 }
 0x11a   : > { %v532_v2 = vpop.f32.mrb[20].mxu0 }
 0x11b   : > { %v533_v3 = vadd.f32 %v532_v2, %v1857_v37  ;;  %v1922_v5 = vpop.f32.mrb[21].mxu0  ;;  %1490 = vmatprep.mubr.bf16.mxu1 %v677_v1 }
 0x11c   : > { %v536_v6 = vpop.f32.mrb[22].mxu0 }
 0x11d   : > { %v537_v7 = vadd.f32 %v536_v6, %v1857_v37  ;;  %v1925_v8 = vpop.f32.mrb[23].mxu0  ;;  %v651_v9 = vmax.f32 %v533_v3, 0.0 }
 0x11f   : > { %v652_v11 = vmax.f32 %v537_v7, 0.0 }
 0x121   : > { %v678_v13 = vpack.c.bf16 %v652_v11, %v651_v9 }
 0x122   : > { %v542_v14 = vpop.f32.mrb[24].mxu0 }
 0x123   : > { %v543_v15 = vadd.f32 %v542_v14, %v1857_v37  ;;  %v1928_v17 = vpop.f32.mrb[25].mxu0  ;;  %1491 = vmatmul.mubr.bf16.gmra.mrb[24].mxu1 %v678_v13 }
 0x124   : > { %v546_v19 = vpop.f32.mrb[26].mxu0 }
 0x125   : > { %v547_v20 = vadd.f32 %v546_v19, %v1857_v37  ;;  %v1931_v21 = vpop.f32.mrb[27].mxu0  ;;  %v653_v23 = vmax.f32 %v543_v15, 0.0 }
 0x127   : > { %v654_v24 = vmax.f32 %v547_v20, 0.0 }
 0x129   : > { %v679_v25 = vpack.c.bf16 %v654_v24, %v653_v23 }
 0x12a   : > { %v552_v26 = vpop.f32.mrb[28].mxu0 }
 0x12b   : > { %v553_v27 = vadd.f32 %v552_v26, %v1857_v37  ;;  %v1934_v29 = vpop.f32.mrb[29].mxu0  ;;  %1494 = vmatprep.mubr.bf16.mxu1 %v679_v25 }
 0x12c   : > { %v556_v31 = vpop.f32.mrb[30].mxu0 }
 0x12d   : > { %v557_v32 = vadd.f32 %v556_v31, %v1857_v37  ;;  %v1937_v33 = vpop.f32.mrb[31].mxu0  ;;  %v655_v38 = vmax.f32 %v553_v27, 0.0 }
 0x12f   : > { %v656_v41 = vmax.f32 %v557_v32, 0.0 }
 0x131   : > { %v680_v42 = vpack.c.bf16 %v656_v41, %v655_v38 }
 0x132   : > { %v562_v43 = vpop.f32.mrb[32].mxu0 }
 0x133   : > { %v563_v47 = vadd.f32 %v562_v43, %v1857_v37  ;;  %v1940_v48 = vpop.f32.mrb[33].mxu0  ;;  %1495 = vmatmul.mubr.bf16.gmra.mrb[28].mxu1 %v680_v42 }
 0x134   : > { %v566_v49 = vpop.f32.mrb[34].mxu0 }
 0x135   : > { %v567_v51 = vadd.f32 %v566_v49, %v1857_v37  ;;  %v1943_v52 = vpop.f32.mrb[35].mxu0  ;;  %v657_v54 = vmax.f32 %v563_v47, 0.0 }
 0x137   : > { %v658_v57 = vmax.f32 %v567_v51, 0.0  ;;  %v275_v51 = vsub.s32 1, %v1848_v34 }
 0x139   : > { %v681_v59 = vpack.c.bf16 %v658_v57, %v657_v54  ;;  %v1974_v54 = vrot.slane %v1854_v36, %v275_v51 }
 0x13a   : > { %v572_v61 = vpop.f32.mrb[36].mxu0 }
 0x13b   : > { %v573_v63 = vadd.f32 %v572_v61, %v1857_v37  ;;  %v1946_v1 = vpop.f32.mrb[37].mxu0  ;;  %1498 = vmatprep.mubr.bf16.mxu1 %v681_v59  ;;  %v495_v34 = vadd.f32 %v1874_v58, %v1974_v54  ;;  %v485_v36 = vadd.f32 %v1860_v40, %v1974_v54  ;;  %v489_v58 = vadd.f32 %v1866_v46, %v1974_v54 }
 0x13c   : > { %v576_v2 = vpop.f32.mrb[38].mxu0  ;;  %v515_v46 = vadd.f32 %v1902_v30, %v1974_v54  ;;  %v509_v30 = vadd.f32 %v1894_v18, %v1974_v54 }
 0x13d   : > { %v577_v3 = vadd.f32 %v576_v2, %v1857_v37  ;;  %v1949_v6 = vpop.f32.mrb[39].mxu0  ;;  %v659_v7 = vmax.f32 %v573_v63, 0.0 }
 0x13f   : > { %v660_v9 = vmax.f32 %v577_v3, 0.0 }
 0x141   : > { %v682_v11 = vpack.c.bf16 %v660_v9, %v659_v7  ;;  %v499_v7 = vadd.f32 %v1880_v0, %v1974_v54 }
 0x142   : > { %v582_v13 = vpop.f32.mrb[40].mxu0 }
 0x143   : > { %v583_v14 = vadd.f32 %v582_v13, %v1857_v37  ;;  %v1952_v15 = vpop.f32.mrb[41].mxu0  ;;  %1499 = vmatmul.mubr.bf16.gmra.mrb[32].mxu1 %v682_v11 }
 0x144   : > { %v586_v19 = vpop.f32.mrb[42].mxu0 }
 0x145   : > { %v587_v20 = vadd.f32 %v586_v19, %v1857_v37  ;;  %v1955_v23 = vpop.f32.mrb[43].mxu0  ;;  %v661_v24 = vmax.f32 %v583_v14, 0.0 }
 0x147   : > { %v662_v25 = vmax.f32 %v587_v20, 0.0 }
 0x149   : > { %v683_v26 = vpack.c.bf16 %v662_v25, %v661_v24 }
 0x14a   : > { %v592_v27 = vpop.f32.mrb[44].mxu0 }
 0x14b   : > { %v593_v31 = vadd.f32 %v592_v27, %v1857_v37  ;;  %v1958_v32 = vpop.f32.mrb[45].mxu0  ;;  %1502 = vmatprep.mubr.bf16.mxu1 %v683_v26 }
 0x14c   : > { %v596_v38 = vpop.f32.mrb[46].mxu0 }
 0x14d   : > { %v597_v41 = vadd.f32 %v596_v38, %v1857_v37  ;;  %v1961_v42 = vpop.f32.mrb[47].mxu0  ;;  %v663_v43 = vmax.f32 %v593_v31, 0.0  ;;  %v1971_v37 = vld [vmem:[%s2149_s4] ss:$0 sm:$0xff] }
 0x14f   : > { %v664_v47 = vmax.f32 %v597_v41, 0.0 }
 0x151   : > { %v684_v49 = vpack.c.bf16 %v664_v47, %v663_v43  ;;  %v505_v47 = vadd.f32 %v1888_v12, %v1974_v54 }
 0x153   : > { %1503 = vmatmul.mubr.bf16.gmra.mrb[36].mxu1 %v684_v49 }
 0x154   : > { %1506 = vmatprep.mubr.bf16.mxu1 %v1871_v56 }
 0x15b   : > { %1507 = vmatmul.mubr.bf16.gmra.mrb[40].mxu1 %v1885_v10 }
 0x15c   : > { %1510 = vmatprep.mubr.bf16.mxu1 %v1899_v28 }
 0x163   : > { %1511 = vmatmul.mubr.bf16.gmra.mrb[44].mxu1 %v1913_v53 }
 0x1d6   : > { %v1484_v57 = vpop.f32.mrb[16].mxu1 }
 0x1d7   : > { %v803_v56 = vadd.f32 %v1484_v57, %v1971_v37  ;;  %v794_v59 = vpop.f32.mrb[17].mxu1  ;;  %v519_v57 = vadd.f32 %v1908_v39, %v1974_v54 }
 0x1d8   : > { %v795_v10 = vadd.f32 %v1971_v37, %v794_v59  ;;  %v1485_v28 = vpop.f32.mrb[18].mxu1 }
 0x1d9   : > { %v923_v53 = vmax.f32 %v803_v56, 0.0  ;;  %v806_v61 = vadd.f32 %v1485_v28, %v1971_v37  ;;  %v797_v63 = vpop.f32.mrb[19].mxu1 }
 0x1da   : > { %v921_v2 = vmax.f32 %v795_v10, 0.0  ;;  %v798_v3 = vadd.f32 %v1971_v37, %v797_v63 }
 0x1db   : > { %v955_v9 = vadd.f32 %v923_v53, %v495_v34  ;;  %v924_v11 = vmax.f32 %v806_v61, 0.0 }
 0x1dc   : > { %v953_v13 = vadd.f32 %v921_v2, %v485_v36  ;;  %v922_v14 = vmax.f32 %v798_v3, 0.0 }
 0x1dd   : > { %v956_v19 = vadd.f32 %v924_v11, %v499_v7  ;;  %v535_v7 = vadd.f32 %v1922_v5, %v1974_v54  ;;  %v529_v5 = vadd.f32 %v1919_v60, %v1974_v54 }
 0x1de   : > { %v954_v20 = vadd.f32 %v922_v14, %v489_v58  ;;  %v525_v58 = vadd.f32 %v1916_v55, %v1974_v54 }
 0x1df   : > { %v1355_v24 = vpack.c.bf16 %v956_v19, %v955_v9  ;;  %v539_v19 = vadd.f32 %v1925_v8, %v1974_v54 }
 0x1e0   : > { %v1350_v25 = vpack.c.bf16 %v954_v20, %v953_v13 }
 0x1e1   : > { %1427 = vst [vmem:[%s1991_s16 + $0x8] sm:$0xff] %v1355_v24  }
 0x1e2   : > { %1351 = vst [vmem:[%s1991_s16] sm:$0xff] %v1350_v25  }
 0x1e6   : > { %v1488_v40 = vpop.f32.mrb[20].mxu1 }
 0x1e7   : > { %v819_v0 = vadd.f32 %v1488_v40, %v1971_v37  ;;  %v810_v26 = vpop.f32.mrb[21].mxu1 }
 0x1e8   : > { %v811_v27 = vadd.f32 %v1971_v37, %v810_v26  ;;  %v1489_v31 = vpop.f32.mrb[22].mxu1 }
 0x1e9   : > { %v927_v38 = vmax.f32 %v819_v0, 0.0  ;;  %v822_v41 = vadd.f32 %v1489_v31, %v1971_v37  ;;  %v813_v43 = vpop.f32.mrb[23].mxu1 }
 0x1ea   : > { %v925_v49 = vmax.f32 %v811_v27, 0.0  ;;  %v814_v51 = vadd.f32 %v1971_v37, %v813_v43  ;;  %v555_v43 = vadd.f32 %v1934_v29, %v1974_v54  ;;  %v549_v29 = vadd.f32 %v1931_v21, %v1974_v54 }
 0x1eb   : > { %v959_v56 = vadd.f32 %v927_v38, %v515_v46  ;;  %v928_v59 = vmax.f32 %v822_v41, 0.0 }
 0x1ec   : > { %v957_v10 = vadd.f32 %v925_v49, %v505_v47  ;;  %v926_v28 = vmax.f32 %v814_v51, 0.0  ;;  %v545_v51 = vadd.f32 %v1928_v17, %v1974_v54 }
 0x1ed   : > { %v960_v34 = vadd.f32 %v928_v59, %v519_v57  ;;  %v559_v59 = vadd.f32 %v1937_v33, %v1974_v54 }
 0x1ee   : > { %v958_v53 = vadd.f32 %v926_v28, %v509_v30 }
 0x1ef   : > { %v1365_v61 = vpack.c.bf16 %v960_v34, %v959_v56 }
 0x1f0   : > { %v1360_v63 = vpack.c.bf16 %v958_v53, %v957_v10 }
 0x1f1   : > { %1429 = vst [vmem:[%s1991_s16 + $0x18] sm:$0xff] %v1365_v61  }
 0x1f2   : > { %1428 = vst [vmem:[%s1991_s16 + $0x10] sm:$0xff] %v1360_v63  }
 0x1f6   : > { %v1492_v12 = vpop.f32.mrb[24].mxu1 }
 0x1f7   : > { %v835_v36 = vadd.f32 %v1492_v12, %v1971_v37  ;;  %v826_v2 = vpop.f32.mrb[25].mxu1 }
 0x1f8   : > { %v827_v3 = vadd.f32 %v1971_v37, %v826_v2  ;;  %v1493_v39 = vpop.f32.mrb[26].mxu1 }
 0x1f9   : > { %v931_v9 = vmax.f32 %v835_v36, 0.0  ;;  %v838_v18 = vadd.f32 %v1493_v39, %v1971_v37  ;;  %v829_v11 = vpop.f32.mrb[27].mxu1  ;;  %v575_v39 = vadd.f32 %v1946_v1, %v1974_v54  ;;  %v569_v1 = vadd.f32 %v1943_v52, %v1974_v54 }
 0x1fa   : > { %v929_v13 = vmax.f32 %v827_v3, 0.0  ;;  %v830_v14 = vadd.f32 %v1971_v37, %v829_v11 }
 0x1fb   : > { %v963_v20 = vadd.f32 %v931_v9, %v535_v7  ;;  %v932_v24 = vmax.f32 %v838_v18, 0.0  ;;  %v565_v18 = vadd.f32 %v1940_v48, %v1974_v54 }
 0x1fc   : > { %v961_v25 = vadd.f32 %v929_v13, %v525_v58  ;;  %v930_v40 = vmax.f32 %v830_v14, 0.0  ;;  %v579_v13 = vadd.f32 %v1949_v6, %v1974_v54 }
 0x1fd   : > { %v964_v0 = vadd.f32 %v932_v24, %v539_v19 }
 0x1fe   : > { %v962_v26 = vadd.f32 %v930_v40, %v529_v5 }
 0x1ff   : > { %v1375_v27 = vpack.c.bf16 %v964_v0, %v963_v20 }
 0x200   : > { %v1370_v31 = vpack.c.bf16 %v962_v26, %v961_v25 }
 0x201   : > { %1431 = vst [vmem:[%s1991_s16 + $0x28] sm:$0xff] %v1375_v27  }
 0x202   : > { %1430 = vst [vmem:[%s1991_s16 + $0x20] sm:$0xff] %v1370_v31  }
 0x206   : > { %v1496_v55 = vpop.f32.mrb[28].mxu1 }
 0x207   : > { %v851_v46 = vadd.f32 %v1496_v55, %v1971_v37  ;;  %v842_v38 = vpop.f32.mrb[29].mxu1  ;;  %v595_v55 = vadd.f32 %v1958_v32, %v1974_v54 }
 0x208   : > { %v843_v41 = vadd.f32 %v1971_v37, %v842_v38  ;;  %v1497_v8 = vpop.f32.mrb[30].mxu1 }
 0x209   : > { %v935_v47 = vmax.f32 %v851_v46, 0.0  ;;  %v854_v60 = vadd.f32 %v1497_v8, %v1971_v37  ;;  %v845_v49 = vpop.f32.mrb[31].mxu1 }
 0x20a   : > { %v933_v57 = vmax.f32 %v843_v41, 0.0  ;;  %v846_v56 = vadd.f32 %v1971_v37, %v845_v49  ;;  %v585_v41 = vadd.f32 %v1952_v15, %v1974_v54 }
 0x20b   : > { %v967_v30 = vadd.f32 %v935_v47, %v555_v43  ;;  %v936_v10 = vmax.f32 %v854_v60, 0.0  ;;  %v599_v47 = vadd.f32 %v1961_v42, %v1974_v54 }
 0x20c   : > { %v965_v28 = vadd.f32 %v933_v57, %v545_v51  ;;  %v934_v34 = vmax.f32 %v846_v56, 0.0  ;;  %v589_v51 = vadd.f32 %v1955_v23, %v1974_v54 }
 0x20d   : > { %v968_v53 = vadd.f32 %v936_v10, %v559_v59 }
 0x20e   : > { %v966_v61 = vadd.f32 %v934_v34, %v549_v29 }
 0x20f   : > { %v1385_v63 = vpack.c.bf16 %v968_v53, %v967_v30  ;;  %v615_v53 = vadd.f32 %v1877_v62, %v1974_v54  ;;  %v609_v62 = vadd.f32 %v1869_v50, %v1974_v54 }
 0x210   : > { %v1380_v12 = vpack.c.bf16 %v966_v61, %v965_v28 }
 0x211   : > { %1433 = vst [vmem:[%s1991_s16 + $0x38] sm:$0xff] %v1385_v63  }
 0x212   : > { %1432 = vst [vmem:[%s1991_s16 + $0x30] sm:$0xff] %v1380_v12   ;;  %v605_v12 = vadd.f32 %v1863_v44, %v1974_v54 }
 0x216   : > { %v1500_v17 = vpop.f32.mrb[32].mxu1 }
 0x217   : > { %v867_v36 = vadd.f32 %v1500_v17, %v1971_v37  ;;  %v858_v2 = vpop.f32.mrb[33].mxu1 }
 0x218   : > { %v859_v3 = vadd.f32 %v1971_v37, %v858_v2  ;;  %v1501_v33 = vpop.f32.mrb[34].mxu1  ;;  %v619_v2 = vadd.f32 %v1883_v4, %v1974_v54 }
 0x219   : > { %v939_v7 = vmax.f32 %v867_v36, 0.0  ;;  %v870_v21 = vadd.f32 %v1501_v33, %v1971_v37  ;;  %v861_v9 = vpop.f32.mrb[35].mxu1 }
 0x21a   : > { %v937_v11 = vmax.f32 %v859_v3, 0.0  ;;  %v862_v58 = vadd.f32 %v1971_v37, %v861_v9 }
 0x21b   : > { %v971_v14 = vadd.f32 %v939_v7, %v575_v39  ;;  %v940_v19 = vmax.f32 %v870_v21, 0.0 }
 0x21c   : > { %v969_v20 = vadd.f32 %v937_v11, %v565_v18  ;;  %v938_v24 = vmax.f32 %v862_v58, 0.0 }
 0x21d   : > { %v972_v5 = vadd.f32 %v940_v19, %v579_v13  ;;  %v635_v19 = vadd.f32 %v1905_v35, %v1974_v54 }
 0x21e   : > { %v970_v25 = vadd.f32 %v938_v24, %v569_v1  ;;  %v625_v24 = vadd.f32 %v1891_v16, %v1974_v54 }
 0x21f   : > { %v1395_v40 = vpack.c.bf16 %v972_v5, %v971_v14 }
 0x220   : > { %v1390_v0 = vpack.c.bf16 %v970_v25, %v969_v20 }
 0x221   : > { %1435 = vst [vmem:[%s1991_s16 + $0x48] sm:$0xff] %v1395_v40   ;;  %v639_v40 = vadd.f32 %v1911_v45, %v1974_v54 }
 0x222   : > { %1434 = vst [vmem:[%s1991_s16 + $0x40] sm:$0xff] %v1390_v0  }
 0x226   : > { %v1504_v48 = vpop.f32.mrb[36].mxu1 }
 0x227   : > { %v883_v26 = vadd.f32 %v1504_v48, %v1971_v37  ;;  %v874_v27 = vpop.f32.mrb[37].mxu1  ;;  %v629_v48 = vadd.f32 %v1897_v22, %v1974_v54 }
 0x228   : > { %v875_v31 = vadd.f32 %v1971_v37, %v874_v27  ;;  %v1505_v6 = vpop.f32.mrb[38].mxu1 }
 0x229   : > { %v943_v46 = vmax.f32 %v883_v26, 0.0  ;;  %v886_v52 = vadd.f32 %v1505_v6, %v1971_v37  ;;  %v877_v38 = vpop.f32.mrb[39].mxu1 }
 0x22a   : > { %v941_v8 = vmax.f32 %v875_v31, 0.0  ;;  %v878_v43 = vadd.f32 %v1971_v37, %v877_v38 }
 0x22b   : > { %v975_v60 = vadd.f32 %v943_v46, %v595_v55  ;;  %v944_v49 = vmax.f32 %v886_v52, 0.0 }
 0x22c   : > { %v973_v32 = vadd.f32 %v941_v8, %v585_v41  ;;  %v942_v57 = vmax.f32 %v878_v43, 0.0 }
 0x22d   : > { %v976_v56 = vadd.f32 %v944_v49, %v599_v47 }
 0x22e   : > { %v974_v59 = vadd.f32 %v942_v57, %v589_v51  ;;  %v1508_v30 = vpop.f32.mrb[40].mxu1 }
 0x22f   : > { %v1405_v10 = vpack.c.bf16 %v976_v56, %v975_v60  ;;  %v899_v15 = vadd.f32 %v1508_v30, %v1971_v37  ;;  %v890_v29 = vpop.f32.mrb[41].mxu1 }
 0x230   : > { %v1400_v28 = vpack.c.bf16 %v974_v59, %v973_v32  ;;  %v891_v34 = vadd.f32 %v1971_v37, %v890_v29  ;;  %v1509_v42 = vpop.f32.mrb[42].mxu1 }
 0x231   : > { %1437 = vst [vmem:[%s1991_s16 + $0x58] sm:$0xff] %v1405_v10   ;;  %v947_v61 = vmax.f32 %v899_v15, 0.0  ;;  %v902_v23 = vadd.f32 %v1509_v42, %v1971_v37  ;;  %v893_v63 = vpop.f32.mrb[43].mxu1 }
 0x232   : > { %1436 = vst [vmem:[%s1991_s16 + $0x50] sm:$0xff] %v1400_v28   ;;  %v945_v17 = vmax.f32 %v891_v34, 0.0  ;;  %v894_v36 = vadd.f32 %v1971_v37, %v893_v63 }
 0x233   : > { %v979_v3 = vadd.f32 %v947_v61, %v615_v53  ;;  %v948_v33 = vmax.f32 %v902_v23, 0.0 }
 0x234   : > { %v977_v39 = vadd.f32 %v945_v17, %v605_v12  ;;  %v946_v7 = vmax.f32 %v894_v36, 0.0 }
 0x235   : > { %v980_v21 = vadd.f32 %v948_v33, %v619_v2 }
 0x236   : > { %v978_v9 = vadd.f32 %v946_v7, %v609_v62  ;;  %v1512_v18 = vpop.f32.mrb[44].mxu1 }
 0x237   : > { %v1415_v44 = vpack.c.bf16 %v980_v21, %v979_v3  ;;  %v915_v11 = vadd.f32 %v1512_v18, %v1971_v37  ;;  %v906_v58 = vpop.f32.mrb[45].mxu1 }
 0x238   : > { %v1410_v13 = vpack.c.bf16 %v978_v9, %v977_v39  ;;  %v907_v14 = vadd.f32 %v1971_v37, %v906_v58  ;;  %v1513_v4 = vpop.f32.mrb[46].mxu1 }
 0x239   : > { %1439 = vst [vmem:[%s1991_s16 + $0x68] sm:$0xff] %v1415_v44   ;;  %v951_v50 = vmax.f32 %v915_v11, 0.0  ;;  %v918_v1 = vadd.f32 %v1513_v4, %v1971_v37  ;;  %v909_v20 = vpop.f32.mrb[47].mxu1 }
 0x23a   : > { %1438 = vst [vmem:[%s1991_s16 + $0x60] sm:$0xff] %v1410_v13   ;;  %v949_v5 = vmax.f32 %v907_v14, 0.0  ;;  %v910_v25 = vadd.f32 %v1971_v37, %v909_v20 }
 0x23b   : > { %v983_v35 = vadd.f32 %v951_v50, %v635_v19  ;;  %v952_v0 = vmax.f32 %v918_v1, 0.0 }
 0x23c   : > { %v981_v26 = vadd.f32 %v949_v5, %v625_v24  ;;  %v950_v27 = vmax.f32 %v910_v25, 0.0 }
 0x23d   : > { %v984_v16 = vadd.f32 %v952_v0, %v639_v40 }
 0x23e   : > { %v982_v31 = vadd.f32 %v950_v27, %v629_v48 }
 0x23f   : > { %v1425_v6 = vpack.c.bf16 %v984_v16, %v983_v35 }
 0x240   : > { %v1420_v45 = vpack.c.bf16 %v982_v31, %v981_v26 }
 0x241   : > { %1441 = vst [vmem:[%s1991_s16 + $0x78] sm:$0xff] %v1425_v6  }
 0x242   : > { %1440 = vst [vmem:[%s1991_s16 + $0x70] sm:$0xff] %v1420_v45  }
 0x243   : > { %1613 = shalt.err (!%p1610_p3)
}
 0x244   : > { %s1614_s25 = scalar_lea.hbm %s2096_s6, 2048  ;;  %s1618_s13 = scalar_lea.hbm %s2150_s5, 4096 }
 0x245   : > { %p1615_p4 = scmp.ne.s32.totalorder %s2096_s6, %s1614_s25  ;;  %p1619_p9 = scmp.lt.u32.totalorder %s2096_s6, %s2150_s5 }
 0x246   : > { %p1620_p10 = scmp.lt.u32.totalorder %s1618_s13, %s1614_s25  ;;  %p1622_p12 = scmp.lt.u32.totalorder %s1614_s25, %s2096_s6 }
 0x247   : > { %p1616_p7 = pnand %p1615_p4, %p1736_p5 }
 0x248   : > { %p1621_p11 = por %p1620_p10, %p1619_p9 }
 0x249   : > { %p1617_p8 = pneg %p1616_p7 }
 0x24a   : > { %p1623_p13 = por %p1622_p12, %p1621_p11 }
 0x24c   : > { %p1624_p0 = pnand %p1623_p13, %p1617_p8 }
 0x24e   : > { %1627 = shalt.err (!%p1624_p0)
}
 0x24f   : > { %s1666_s16 = smov 64   ;;  %s1667_s17 = smov 4  }
 0x250   : > { %1522 = dma.vmem_to_hbm [thread:$0]  (%p1736_p5), %s2098_s23, 2048, %s2096_s6, %s2104_s8, %s1666_s16, %s1666_s16, %s1667_s17  }
 0x251 PF: > { %p1528_p1 = scmp.ge.s32.totalorder %s1662_s21, 2  ;;  %s1174_s26 = sand.u32 1, %s1650_s18  }
 0x252   : > { %s1175_s30 = scalar_lea.sflag [#allocation3], %s1174_s26 }
 0x253   : > { %p1525_p2 = pnand %p1528_p1, %p1740_p6 }
 0x255   : > { %1645 = dma.done.wait (!%p1525_p2), %s1175_s30, 2048  }
 0x256   : > { %1647 = vsyncadd (!%p1525_p2), %s1175_s30, 4294965248  ;;  %p15_p3 = scmp.ge.s32.totalorder %s1723_s24, 4   ;;  %s2153_s18 = smov %s1654_s19 }
 0x257   : > { %s2154_s19 = smov %s1658_s20  ;;  %s2155_s20 = smov %s1734_s27 }
 0x258   : > { %s2156_s21 = smov %s1723_s24  ;;  %17 = sbr.rel (!%p15_p3) target bundleno = 3 (0x3), region = 75 }
 0x25f   :  { %1180 = vsyncpa [#allocation3], 1 }
 0x260   :  { %1182 = vsyncpa [#allocation3 + $0x1], 1 }

</bundles_post_ra>
